<compile_context>
chip_gen: v5e
topology: v5e:2x2
jax: 0.10.0
libtpu: 0.0.40
codegen_flags: <defaults>
</compile_context>

<pallas_src>
import jax
import jax.numpy as jnp
from jax.experimental import pallas as pl
from jax.experimental.pallas import tpu as pltpu

LANE = 128     # lane width (last-dim alignment for dense hidden tiles)
SUBLANE = 8    # sublane width for 32-bit dtypes


def _round_up(x, m):
    return ((x + m - 1) // m) * m


def _pad2(a, rows, cols):
    return jnp.pad(a, ((0, rows - a.shape[0]), (0, cols - a.shape[1])))


def _block_spec(shape, index_map, buffers=None):
    """BlockSpec with an optional explicit pipeline depth (graceful fallback)."""
    if buffers is not None and hasattr(pl, "Buffered"):
        try:
            return pl.BlockSpec(shape, index_map, pipeline_mode=pl.Buffered(buffers))
        except TypeError:
            pass
    return pl.BlockSpec(shape, index_map)


def fnn_kernel(x_ref, w1_ref, b1_ref, w2_ref, b2_ref, w3_ref, b3_ref, o_ref):
    # Layer 1: Linear + ReLU (MXU matmul, f32 accumulation, f32 epilogue).
    h1 = jnp.dot(x_ref[...], w1_ref[...], preferred_element_type=jnp.float32)
    h1 = jnp.maximum(h1 + b1_ref[...], 0.0)
    # Layer 2: Linear + ReLU (cast activation back to the MXU operand dtype).
    h2 = jnp.dot(h1.astype(w2_ref.dtype), w2_ref[...],
                 preferred_element_type=jnp.float32)
    h2 = jnp.maximum(h2 + b2_ref[...], 0.0)
    # Layer 3: Linear (no activation).
    out = jnp.dot(h2.astype(w3_ref.dtype), w3_ref[...],
                  preferred_element_type=jnp.float32)
    o_ref[...] = (out + b3_ref[...]).astype(o_ref.dtype)


def fnn_forward(x, w1, b1, w2, b2, w3, b3, *,
                compute_dtype=None, batch_tile=None):
    """Fused 3-layer MLP forward. Returns (batch, out_features) float32.

    compute_dtype=None -> use x.dtype as the MXU operand dtype (pass bf16 x on
    v6e/v7x for the fast path; f32 accumulation + f32 epilogue always).
    """
    batch, in_f = x.shape
    h0_f = w1.shape[1]
    h1_f = w2.shape[1]
    out_f = w3.shape[1]

    if compute_dtype is None:
        compute_dtype = x.dtype
    compute_dtype = jnp.dtype(compute_dtype)
    cbytes = compute_dtype.itemsize
    sub = SUBLANE * max(1, 4 // cbytes)      # packed sublane tile: 8 f32, 16 bf16

    # ---- generation-aware VMEM budget -------------------------------------
    try:
        vmem_cap = int(getattr(pltpu.get_tpu_info(), "vmem_capacity_bytes", 64 << 20))
    except Exception:                        # pragma: no cover - defensive
        vmem_cap = 64 << 20
    vmem_budget = int(vmem_cap * 0.75)       # ~96 MiB v5e/v6e, ~48 MiB v7x
    big_vmem = vmem_cap >= (96 << 20)

    if batch_tile is None:
        batch_tile = 2048 if big_vmem else 1024
    x_buffers = 3 if big_vmem else 2         # deeper x pipelining when VMEM is ample

    # ---- hidden (internal-only) dims padded to lane multiples --------------
    h0_p = _round_up(h0_f, LANE)
    h1_p = _round_up(h1_f, LANE)
    # TODO(synk): pad hidden dims to 256 on v6e/v7x once shapes become MXU-bound.

    # ---- batch tile: cap so grid has >=2 steps (megacore on v7x) -----------
    tb = min(_round_up(batch_tile, sub),
             _round_up(pl.cdiv(batch, 2), sub),
             _round_up(batch, sub))
    tb = max(tb, sub)

    def _vmem_needed(tb_):
        return (x_buffers * tb_ * in_f * cbytes            # x multi-buffer
                + 2 * tb_ * out_f * 4                      # out double-buffer (f32)
                + (in_f * h0_p + h0_p * h1_p + h1_p * out_f) * cbytes   # resident W (1x)
                + (h0_p + h1_p + out_f) * 4                # resident biases (f32)
                + 4 * tb_ * (h0_p + h1_p)                  # f32 intermediates
                + (2 << 20))                               # headroom

    while tb > sub and _vmem_needed(tb) > vmem_budget:
        tb = max(sub, _round_up(tb // 2, sub))

    batch_p = _round_up(batch, tb)
    grid = (batch_p // tb,)

    # ---- operands: no feature padding of x / output (blocks = full dims) ---
    xp = x
    if xp.dtype != compute_dtype:
        # TODO(synk): pass x pre-cast in compute_dtype to avoid this HBM pass.
        xp = xp.astype(compute_dtype)
    if batch_p != batch:
        xp = jnp.pad(xp, ((0, batch_p - batch), (0, 0)))

    w1p = _pad2(w1, in_f, h0_p).astype(compute_dtype)
    w2p = _pad2(w2, h0_p, h1_p).astype(compute_dtype)
    w3p = _pad2(w3, h1_p, out_f).astype(compute_dtype)
    b1p = _pad2(jnp.reshape(b1, (1, -1)), 1, h0_p).astype(jnp.float32)
    b2p = _pad2(jnp.reshape(b2, (1, -1)), 1, h1_p).astype(jnp.float32)
    b3p = jnp.reshape(b3, (1, out_f)).astype(jnp.float32)

    weight_bytes = ((w1p.size + w2p.size + w3p.size) * cbytes
                    + (b1p.size + b2p.size + b3p.size) * 4)
    flops = 2 * batch_p * (in_f * h0_p + h0_p * h1_p + h1_p * out_f)
    bytes_accessed = batch_p * in_f * cbytes + batch_p * out_f * 4 + weight_bytes

    need = _vmem_needed(tb)
    vmem_limit = int(min(max(need + need // 2, 16 << 20), vmem_budget))

    const = lambda i: (0, 0)   # resident weights/biases: same block every step
    in_specs = [
        _block_spec((tb, in_f), lambda i: (i, 0), buffers=x_buffers),  # x: batch-tiled
        _block_spec((in_f, h0_p), const, buffers=1),                   # w1 (resident)
        _block_spec((1, h0_p), const, buffers=1),                      # b1
        _block_spec((h0_p, h1_p), const, buffers=1),                   # w2
        _block_spec((1, h1_p), const, buffers=1),                      # b2
        _block_spec((h1_p, out_f), const, buffers=1),                  # w3
        _block_spec((1, out_f), const, buffers=1),                     # b3
    ]
    out_spec = pl.BlockSpec((tb, out_f), lambda i: (i, 0))

    out = pl.pallas_call(
        fnn_kernel,
        out_shape=jax.ShapeDtypeStruct((batch_p, out_f), jnp.float32),
        grid=grid,
        in_specs=in_specs,
        out_specs=out_spec,
        compiler_params=pltpu.CompilerParams(
            dimension_semantics=("parallel",),   # shard batch loop over TCs on v7x
            vmem_limit_bytes=vmem_limit,
        ),
        cost_estimate=pl.CostEstimate(
            flops=flops, transcendentals=0, bytes_accessed=bytes_accessed),
    )(xp, w1p, b1p, w2p, b2p, w3p, b3p)

    if batch_p != batch:
        out = out[:batch]
    return out


def init_params(key, input_size, hidden_sizes, output_size, dtype=jnp.float32):
    """Deterministic synthetic parameter init (PyTorch-style uniform bounds)."""
    dims = [input_size, hidden_sizes[0], hidden_sizes[1], output_size]
    params = []
    for i in range(3):
        fan_in, fan_out = dims[i], dims[i + 1]
        key, kw, kb = jax.random.split(key, 3)
        bound = 1.0 / float(fan_in) ** 0.5
        w = jax.random.uniform(kw, (fan_in, fan_out), dtype, -bound, bound)
        b = jax.random.uniform(kb, (fan_out,), dtype, -bound, bound)
        params += [w, b]
    return params


def reference_forward(x, w1, b1, w2, b2, w3, b3):
    h1 = jnp.maximum(x @ w1 + b1[None, :], 0.0)
    h2 = jnp.maximum(h1 @ w2 + b2[None, :], 0.0)
    return h2 @ w3 + b3[None, :]


if __name__ == "__main__":
    # Small shapes consistent with the module's forward:
    # x: (batch, input_size); hidden_sizes = (64, 32); output_size = 16
    batch, input_size = 8, 32
    hidden_sizes = (64, 32)
    output_size = 16

    key = jax.random.PRNGKey(0)
    key, kx = jax.random.split(key)
    x = jax.random.normal(kx, (batch, input_size), dtype=jnp.float32)

    w1, b1, w2, b2, w3, b3 = init_params(key, input_size, hidden_sizes, output_size)
    y_ref = reference_forward(x, w1, b1, w2, b2, w3, b3)

    # f32 path (exact match vs reference; compute dtype follows x.dtype).
    y = fnn_forward(x, w1, b1, w2, b2, w3, b3)
    y = jax.block_until_ready(y)
    assert y.shape == (batch, output_size)
    assert jnp.allclose(y, y_ref, atol=1e-5, rtol=1e-5), "f32 mismatch vs JAX reference"

    # bf16 MXU-operand path (f32 accumulate + f32 epilogue) — the v6e/v7x recipe.
    # x is pre-cast so the wrapper does not add an extra HBM pass over it.
    y_bf16 = fnn_forward(x.astype(jnp.bfloat16), w1, b1, w2, b2, w3, b3,
                         compute_dtype=jnp.bfloat16)
    y_bf16 = jax.block_until_ready(y_bf16)
    assert y_bf16.shape == (batch, output_size)
    assert jnp.allclose(y_bf16, y_ref, atol=1e-1, rtol=1e-1), "bf16 mismatch vs JAX reference"

    print("KERNEL_OK")
</pallas_src>

<mosaic_0001>
module attributes {stable_mosaic.version = 11 : i64} {
  func.func @fnn_kernel(%arg0: i32, %arg1: memref<8x32xf32, #tpu.memory_space<vmem>>, %arg2: memref<32x128xf32, #tpu.memory_space<vmem>>, %arg3: memref<1x128xf32, #tpu.memory_space<vmem>>, %arg4: memref<128x128xf32, #tpu.memory_space<vmem>>, %arg5: memref<1x128xf32, #tpu.memory_space<vmem>>, %arg6: memref<128x16xf32, #tpu.memory_space<vmem>>, %arg7: memref<1x16xf32, #tpu.memory_space<vmem>>, %arg8: memref<8x16xf32, #tpu.memory_space<vmem>>) attributes {dimension_semantics = [#tpu.dimension_semantics<parallel>], iteration_bounds = array<i64: 1>, scalar_prefetch = 0 : i64, scratch_operands = 0 : i64, tpu.core_type = #tpu.core_type<tc>, window_params = [{pipeline_mode = #tpu.pipeline_mode<double_buffered>, transform_indices = @transform_0, window_bounds = array<i64: 8, 32>}, {pipeline_mode = #tpu.pipeline_mode<synchronous>, transform_indices = @transform_1, window_bounds = array<i64: 32, 128>}, {pipeline_mode = #tpu.pipeline_mode<synchronous>, transform_indices = @transform_2, window_bounds = array<i64: 1, 128>}, {pipeline_mode = #tpu.pipeline_mode<synchronous>, transform_indices = @transform_3, window_bounds = array<i64: 128, 128>}, {pipeline_mode = #tpu.pipeline_mode<synchronous>, transform_indices = @transform_4, window_bounds = array<i64: 1, 128>}, {pipeline_mode = #tpu.pipeline_mode<synchronous>, transform_indices = @transform_5, window_bounds = array<i64: 128, 16>}, {pipeline_mode = #tpu.pipeline_mode<synchronous>, transform_indices = @transform_6, window_bounds = array<i64: 1, 16>}, {transform_indices = @transform_7, window_bounds = array<i64: 8, 16>}]} {
    %c0 = arith.constant 0 : index
    %c0_0 = arith.constant 0 : index
    %0 = vector.load %arg1[%c0, %c0_0] : memref<8x32xf32, #tpu.memory_space<vmem>>, vector<8x32xf32>
    %c0_1 = arith.constant 0 : index
    %c0_2 = arith.constant 0 : index
    %1 = vector.load %arg2[%c0_1, %c0_2] : memref<32x128xf32, #tpu.memory_space<vmem>>, vector<32x128xf32>
    %cst = arith.constant dense<0.000000e+00> : vector<8x128xf32>
    %2 = tpu.matmul %0, %1, %cst {dimension_numbers = #tpu.dot_dimension_numbers<[1], [0], [0], [1], [0, 0, 1, 1], [], []>} : vector<8x32xf32>, vector<32x128xf32>, vector<8x128xf32> -> vector<8x128xf32>
    %c0_3 = arith.constant 0 : index
    %c0_4 = arith.constant 0 : index
    %3 = vector.load %arg3[%c0_3, %c0_4] : memref<1x128xf32, #tpu.memory_space<vmem>>, vector<1x128xf32>
    %4 = vector.broadcast %3 : vector<1x128xf32> to vector<8x128xf32>
    %5 = arith.addf %2, %4 : vector<8x128xf32>
    %cst_5 = arith.constant 0.000000e+00 : f32
    %6 = vector.broadcast %cst_5 : f32 to vector<8x128xf32>
    %7 = arith.maximumf %5, %6 : vector<8x128xf32>
    %c0_6 = arith.constant 0 : index
    %c0_7 = arith.constant 0 : index
    %8 = vector.load %arg4[%c0_6, %c0_7] : memref<128x128xf32, #tpu.memory_space<vmem>>, vector<128x128xf32>
    %cst_8 = arith.constant dense<0.000000e+00> : vector<8x128xf32>
    %9 = tpu.matmul %7, %8, %cst_8 {dimension_numbers = #tpu.dot_dimension_numbers<[1], [0], [0], [1], [0, 0, 1, 1], [], []>} : vector<8x128xf32>, vector<128x128xf32>, vector<8x128xf32> -> vector<8x128xf32>
    %c0_9 = arith.constant 0 : index
    %c0_10 = arith.constant 0 : index
    %10 = vector.load %arg5[%c0_9, %c0_10] : memref<1x128xf32, #tpu.memory_space<vmem>>, vector<1x128xf32>
    %11 = vector.broadcast %10 : vector<1x128xf32> to vector<8x128xf32>
    %12 = arith.addf %9, %11 : vector<8x128xf32>
    %cst_11 = arith.constant 0.000000e+00 : f32
    %13 = vector.broadcast %cst_11 : f32 to vector<8x128xf32>
    %14 = arith.maximumf %12, %13 : vector<8x128xf32>
    %c0_12 = arith.constant 0 : index
    %c0_13 = arith.constant 0 : index
    %15 = vector.load %arg6[%c0_12, %c0_13] : memref<128x16xf32, #tpu.memory_space<vmem>>, vector<128x16xf32>
    %cst_14 = arith.constant dense<0.000000e+00> : vector<8x16xf32>
    %16 = tpu.matmul %14, %15, %cst_14 {dimension_numbers = #tpu.dot_dimension_numbers<[1], [0], [0], [1], [0, 0, 1, 1], [], []>} : vector<8x128xf32>, vector<128x16xf32>, vector<8x16xf32> -> vector<8x16xf32>
    %c0_15 = arith.constant 0 : index
    %c0_16 = arith.constant 0 : index
    %17 = vector.load %arg7[%c0_15, %c0_16] : memref<1x16xf32, #tpu.memory_space<vmem>>, vector<1x16xf32>
    %18 = vector.broadcast %17 : vector<1x16xf32> to vector<8x16xf32>
    %19 = arith.addf %16, %18 : vector<8x16xf32>
    %c0_17 = arith.constant 0 : index
    %c0_18 = arith.constant 0 : index
    %20 = vector.load %arg8[%c0_17, %c0_18] : memref<8x16xf32, #tpu.memory_space<vmem>>, vector<8x16xf32>
    tpu.vector_store %arg8[%c0_17, %c0_18], %19 {strides = array<i32>} : memref<8x16xf32, #tpu.memory_space<vmem>>, vector<8x16xf32>,
    return
  }
  func.func @transform_0(%arg0: i32) -> (i32, i32) {
    %c0_i32 = arith.constant 0 : i32
    %c0_i32_0 = arith.constant 0 : i32
    return %arg0, %c0_i32 : i32, i32
  }
  func.func @transform_1(%arg0: i32) -> (i32, i32) {
    %c0_i32 = arith.constant 0 : i32
    %c0_i32_0 = arith.constant 0 : i32
    %c0_i32_1 = arith.constant 0 : i32
    return %c0_i32, %c0_i32_0 : i32, i32
  }
  func.func @transform_2(%arg0: i32) -> (i32, i32) {
    %c0_i32 = arith.constant 0 : i32
    %c0_i32_0 = arith.constant 0 : i32
    %c0_i32_1 = arith.constant 0 : i32
    return %c0_i32, %c0_i32_0 : i32, i32
  }
  func.func @transform_3(%arg0: i32) -> (i32, i32) {
    %c0_i32 = arith.constant 0 : i32
    %c0_i32_0 = arith.constant 0 : i32
    %c0_i32_1 = arith.constant 0 : i32
    return %c0_i32, %c0_i32_0 : i32, i32
  }
  func.func @transform_4(%arg0: i32) -> (i32, i32) {
    %c0_i32 = arith.constant 0 : i32
    %c0_i32_0 = arith.constant 0 : i32
    %c0_i32_1 = arith.constant 0 : i32
    return %c0_i32, %c0_i32_0 : i32, i32
  }
  func.func @transform_5(%arg0: i32) -> (i32, i32) {
    %c0_i32 = arith.constant 0 : i32
    %c0_i32_0 = arith.constant 0 : i32
    %c0_i32_1 = arith.constant 0 : i32
    return %c0_i32, %c0_i32_0 : i32, i32
  }
  func.func @transform_6(%arg0: i32) -> (i32, i32) {
    %c0_i32 = arith.constant 0 : i32
    %c0_i32_0 = arith.constant 0 : i32
    %c0_i32_1 = arith.constant 0 : i32
    return %c0_i32, %c0_i32_0 : i32, i32
  }
  func.func @transform_7(%arg0: i32) -> (i32, i32) {
    %c0_i32 = arith.constant 0 : i32
    %c0_i32_0 = arith.constant 0 : i32
    return %arg0, %c0_i32 : i32, i32
  }
}

</mosaic_0001>

<bundles_post_ra>
// kernel: tpu_custom_call.1
= control target key start
LH: loop header
LB: loop body
LE: loop exit
PB: predicated region body
PF: predicated region fallthrough
CT: control target
= control target key end

     0   :  { %12 = vsyncpa [#allocation3], 0  ;;  %s395_s0 = inlined_call_operand.vmem [shape: f32[8,32], index: 0, kind: input, shape index: {}]   ;;  %s396_s1 = inlined_call_operand.hbm [shape: f32[32,128], index: 1, kind: input, shape index: {}]   ;;  %s397_s2 = inlined_call_operand.vmem [shape: f32[1,128], index: 2, kind: input, shape index: {}]   ;;  %s398_s3 = inlined_call_operand.vmem [shape: f32[128,128], index: 3, kind: input, shape index: {}]   ;;  %s399_s4 = inlined_call_operand.vmem [shape: f32[1,128], index: 4, kind: input, shape index: {}]   ;;  %s400_s5 = inlined_call_operand.vmem [shape: f32[128,16], index: 5, kind: input, shape index: {}]   ;;  %s401_s6 = inlined_call_operand.vmem [shape: f32[1,16], index: 6, kind: input, shape index: {}]   ;;  %s402_s7 = inlined_call_operand.hbm [shape: f32[8,16], index: 7, kind: output, shape index: {}]  }
   0x1   :  { %13 = vsyncpa [#allocation4], 0  ;;  %s20_s26 = sshll.u32 %s396_s1, 4  ;;  %s237_s27 = smov [#allocation2]   ;;  %s21_s26 = int_to_ptr.hbm [resolvable:$true] %s20_s26 }
   0x2   :  { %s22_s28 = sshll.u32 %s237_s27, 4  ;;  %s238_s29 = smov 128   ;;  %s23_s28 = int_to_ptr.vmem [resolvable:$true] %s22_s28 }
   0x3   :  { %s239_s30 = smov 8  }
   0x4   :  { %28 = dma.hbm_to_vmem [thread:$0]  %s21_s26, 512, %s23_s28, [#allocation3], %s238_s29, %s238_s29, %s239_s30  }
   0x5   :  { %233 = dma.done.wait [#allocation3], 512  }
   0x6   :  { %234 = vsyncadd [#allocation3], 4294966784  ;;  %v47_v0 = vld [vmem:[#allocation2 + $0x18] sm:$0xff]  ;;  %v46_v1 = vld [vmem:[#allocation2 + $0x10] sm:$0xff]  ;;  %vm52_vm0 = vcmask 261120   ;;  %s240_s25 = smov [#allocation5]  }
   0x7   :  { %68 = vmatpush.msra.mxu0 %v47_v0  ;;  %v92_v2 = vld [vmem:[%s398_s3 + $0x78] sm:$0xff]  ;;  %v45_v3 = vld [vmem:[#allocation2 + $0x8] sm:$0xff]  ;;  %v91_v4 = vld [vmem:[%s398_s3 + $0x70] sm:$0xff]  ;;  %s165_s26 = sshll.u32 %s240_s25, 4  ;;  %s167_s29 = sshll.u32 %s402_s7, 4  ;;  %vm158_vm1 = vcmask 130048   ;;  %s166_s26 = int_to_ptr.vmem [resolvable:$true] %s165_s26  ;;  %s168_s29 = int_to_ptr.hbm [resolvable:$true] %s167_s29 }
   0x8   :  { %97 = vmatpush.msra.mxu1 %v92_v2  ;;  %v90_v5 = vld [vmem:[%s398_s3 + $0x68] sm:$0xff]  ;;  %v44_v6 = vld [vmem:[#allocation2] sm:$0xff]  ;;  %v88_v9 = vld [vmem:[%s398_s3 + $0x58] sm:$0xff] }
   0x9   :  { %69 = vmatpush.msra.mxu0 %v46_v1  ;;  %v43_v7 = vld [vmem:[%s395_s0] sm:$0xff]  ;;  %v87_v10 = vld [vmem:[%s398_s3 + $0x50] sm:$0xff]  ;;  %v86_v11 = vld [vmem:[%s398_s3 + $0x48] sm:$0xff] }
   0xa   :  { %98 = vmatpush.msra.mxu1 %v91_v4  ;;  %v89_v8 = vld [vmem:[%s398_s3 + $0x60] sm:$0xff]  ;;  %v84_v13 = vld [vmem:[%s398_s3 + $0x38] sm:$0xff]  ;;  %v83_v14 = vld [vmem:[%s398_s3 + $0x30] sm:$0xff] }
   0xb   :  { %70 = vmatpush.msra.mxu0 %v45_v3  ;;  %v85_v12 = vld [vmem:[%s398_s3 + $0x40] sm:$0xff]  ;;  %v82_v15 = vld [vmem:[%s398_s3 + $0x28] sm:$0xff]  ;;  %v80_v17 = vld [vmem:[%s398_s3 + $0x18] sm:$0xff] }
   0xc   :  { %99 = vmatpush.msra.mxu1 %v90_v5  ;;  %v81_v16 = vld [vmem:[%s398_s3 + $0x20] sm:$0xff]  ;;  %v79_v18 = vld [vmem:[%s398_s3 + $0x10] sm:$0xff]  ;;  %v78_v19 = vld [vmem:[%s398_s3 + $0x8] sm:$0xff] }
   0xd   :  { %71 = vmatpush.msra.mxu0 %v44_v6  ;;  %v77_v20 = vld [vmem:[%s398_s3] sm:$0xff]  ;;  %v133_v21 = vld [vmem:[%s400_s5 + $0x78] sm:$0xff]  ;;  %v132_v22 = vld [vmem:[%s400_s5 + $0x70] sm:$0xff] }
   0xe   :  { %177 = vmatmul.msk.f32.vlgmr.msra.gmra.mxu0 %vm52_vm0, %v43_v7  ;;  %100 = vmatpush.msra.mxu1 %v89_v8  ;;  %v131_v23 = vld [vmem:[%s400_s5 + $0x68] sm:$0xff]  ;;  %v130_v24 = vld [vmem:[%s400_s5 + $0x60] sm:$0xff]  ;;  %v129_v25 = vld [vmem:[%s400_s5 + $0x58] sm:$0xff] }
   0xf   :  { %138 = vmatpush.msra.mxu2 %v133_v21  ;;  %v128_v26 = vld [vmem:[%s400_s5 + $0x50] sm:$0xff]  ;;  %v127_v27 = vld [vmem:[%s400_s5 + $0x48] sm:$0xff]  ;;  %v126_v28 = vld [vmem:[%s400_s5 + $0x40] sm:$0xff] }
  0x10   :  { %101 = vmatpush.msra.mxu1 %v88_v9  ;;  %v125_v29 = vld [vmem:[%s400_s5 + $0x38] sm:$0xff]  ;;  %v124_v30 = vld [vmem:[%s400_s5 + $0x30] sm:$0xff]  ;;  %v123_v31 = vld [vmem:[%s400_s5 + $0x28] sm:$0xff] }
  0x11   :  { %139 = vmatpush.msra.mxu2 %v132_v22  ;;  %v122_v32 = vld [vmem:[%s400_s5 + $0x20] sm:$0xff]  ;;  %v121_v33 = vld [vmem:[%s400_s5 + $0x18] sm:$0xff]  ;;  %v120_v38 = vld [vmem:[%s400_s5 + $0x10] sm:$0xff] }
  0x12   :  { %102 = vmatpush.msra.mxu1 %v87_v10  ;;  %v182_v34 = vld [vmem:[%s397_s2] ss:$0 sm:$0xff]  ;;  %v119_v39 = vld [vmem:[%s400_s5 + $0x8] sm:$0xff] }
  0x13   :  { %140 = vmatpush.msra.mxu2 %v131_v23  ;;  %v118_v40 = vld [vmem:[%s400_s5] sm:$0xff] }
  0x14   :  { %103 = vmatpush.msra.mxu1 %v86_v11  ;;  %v183_v41 = vld [vmem:[%s399_s4] ss:$0 sm:$0xff] }
  0x15   :  { %141 = vmatpush.msra.mxu2 %v130_v24  ;;  %v184_v45 = vld [vmem:[%s401_s6] ss:$0 sm:$0xff] }
  0x16   :  { %104 = vmatpush.msra.mxu1 %v85_v12 }
  0x17   :  { %142 = vmatpush.msra.mxu2 %v129_v25 }
  0x18   :  { %105 = vmatpush.msra.mxu1 %v84_v13 }
  0x19   :  { %143 = vmatpush.msra.mxu2 %v128_v26 }
  0x1a   :  { %106 = vmatpush.msra.mxu1 %v83_v14 }
  0x1b   :  { %144 = vmatpush.msra.mxu2 %v127_v27 }
  0x1c   :  { %107 = vmatpush.msra.mxu1 %v82_v15 }
  0x1d   :  { %145 = vmatpush.msra.mxu2 %v126_v28 }
  0x1e   :  { %108 = vmatpush.msra.mxu1 %v81_v16 }
  0x1f   :  { %146 = vmatpush.msra.mxu2 %v125_v29 }
  0x20   :  { %109 = vmatpush.msra.mxu1 %v80_v17 }
  0x21   :  { %147 = vmatpush.msra.mxu2 %v124_v30 }
  0x22   :  { %110 = vmatpush.msra.mxu1 %v79_v18 }
  0x23   :  { %148 = vmatpush.msra.mxu2 %v123_v31 }
  0x24   :  { %111 = vmatpush.msra.mxu1 %v78_v19 }
  0x25   :  { %149 = vmatpush.msra.mxu2 %v122_v32 }
  0x26   :  { %112 = vmatpush.msra.mxu1 %v77_v20 }
  0x27   :  { %150 = vmatpush.msra.mxu2 %v121_v33 }
  0x29   :  { %151 = vmatpush.msra.mxu2 %v120_v38 }
  0x2b   :  { %152 = vmatpush.msra.mxu2 %v119_v39 }
  0x2d   :  { %153 = vmatpush.msra.mxu2 %v118_v40 }
  0x8b   :  { %v73_v35 = vpop.f32.mrf.mxu0 }
  0x8c   :  { %v74_v36 = vadd.f32 %v182_v34, %v73_v35 }
  0x8e   :  { %v76_v37 = vmax.f32 %v74_v36, 0.0 }
  0x90   :  { %113 = vmatmul.f32.vlgmr.msra.gmra.mxu1 %v76_v37 }
 0x10d   :  { %v114_v42 = vpop.f32.mrf.mxu1 }
 0x10e   :  { %v115_v43 = vadd.f32 %v183_v41, %v114_v42 }
 0x110   :  { %v117_v44 = vmax.f32 %v115_v43, 0.0 }
 0x112   :  { %154 = vmatmul.f32.vlgmr.msra.gmra.mxu2 %v117_v44 }
 0x195   :  { %v155_v46 = vpop.f32.mrf.mxu2 }
 0x196   :  { %v156_v47 = vadd.f32 %v184_v45, %v155_v46 }
 0x198   :  { %159 = vst.msk [vmem:[#allocation5] sm:$0xff] %vm158_vm1, %v156_v47 }
 0x199   :  { %170 = dma.vmem_to_hbm [thread:$0]  %s166_s26, 128, %s168_s29, [#allocation4]  }
 0x19a   :  { %235 = dma.done.wait [#allocation4], 128  }
 0x19b   :  { %236 = vsyncadd [#allocation4], 4294967168 }
 0x19c   :  { %175 = vsyncpa [#allocation3], 1 }
 0x19d   :  { %176 = vsyncpa [#allocation4], 1 }

</bundles_post_ra>
